<compile_context>
chip_gen: v5e
topology: v5e:2x2
jax: 0.10.0
libtpu: 0.0.40
codegen_flags: <defaults>
</compile_context>

<pallas_src>
import jax
import jax.numpy as jnp
from jax.experimental import pallas as pl
from jax.experimental.pallas import tpu as pltpu


def _decoder_head_kernel(x_ref, w_ref, bias_ref, out_ref):
    # x_ref   : (TM, H)   VMEM, activation dtype (f32 or bf16)
    # w_ref   : (H, TN)   VMEM, same dtype (W.T, zero-padded classes)
    # bias_ref: (1,)      SMEM, f32 scalar (lm_output_learned_bias)
    # out_ref : (TM, TN)  VMEM, activation dtype
    y = jnp.dot(x_ref[...], w_ref[...], preferred_element_type=jnp.float32)
    out_ref[...] = (y + bias_ref[0]).astype(out_ref.dtype)


def _round_up(x, m):
    return (x + m - 1) // m * m


def graphormer_decoder_head(x, weight, bias, *, tm=None, tn=512):
    """x: (B, S, H); weight: (C, H) as in nn.Linear; bias: scalar / (1,)."""
    B, S, H = x.shape
    C = weight.shape[0]
    rows = B * S

    # Keep activations in their native dtype (bf16 stays bf16 -> halves the
    # dominant HBM read); anything exotic falls back to f32.
    mat_dtype = x.dtype if x.dtype in (jnp.float32, jnp.bfloat16) else jnp.float32
    out_dtype = mat_dtype

    # Free reshape (row-major contiguous), NO row padding / NO extra HBM pass.
    x2 = x.reshape(rows, H).astype(mat_dtype)

    # Row tile: large (512) for streaming efficiency, but guarantee >= 2 grid
    # steps when rows allow it so v7x's two TensorCores both get work.
    if tm is None:
        TM = max(8, min(512, _round_up(pl.cdiv(rows, 2), 8)))
    else:
        TM = tm
    grid_m = pl.cdiv(rows, TM)

    # Classes: zero-pad the (small) weight to a lane-dense multiple of 128 and
    # tile it along a second grid axis so large num_classes never blows VMEM.
    Cp = _round_up(max(C, 1), 128)
    TN = min(Cp, tn)
    grid_n = pl.cdiv(Cp, TN)

    wT = jnp.zeros((H, Cp), mat_dtype).at[:, :C].set(weight.astype(mat_dtype).T)
    bias1 = jnp.asarray(bias, jnp.float32).reshape(1)

    itm = jnp.dtype(mat_dtype).itemsize
    otm = jnp.dtype(out_dtype).itemsize
    # Double-buffered x tile + double-buffered weight tile + double-buffered
    # out tile + f32 accumulator slack; ~50% headroom, capped at 48 MiB.
    footprint = itm * (2 * TM * H + 2 * H * TN) + otm * 2 * TM * TN + 4 * TM * TN
    vmem_limit = min(48 << 20, max(16 << 20, int(footprint * 1.5)))

    compiler_params = pltpu.CompilerParams(
        dimension_semantics=("parallel", "parallel"),
        vmem_limit_bytes=vmem_limit,
    )
    cost = pl.CostEstimate(
        flops=2 * rows * H * Cp,
        transcendentals=0,
        bytes_accessed=itm * (rows * H + H * Cp) + otm * rows * Cp,
    )

    out = pl.pallas_call(
        _decoder_head_kernel,
        out_shape=jax.ShapeDtypeStruct((rows, Cp), out_dtype),
        grid_spec=pl.GridSpec(
            grid=(grid_m, grid_n),
            in_specs=[
                pl.BlockSpec((TM, H), lambda i, j: (i, 0)),   # x rows, partial tail masked
                pl.BlockSpec((H, TN), lambda i, j: (0, j)),   # W.T class tile
                pl.BlockSpec(memory_space=pltpu.MemorySpace.SMEM),  # scalar bias
            ],
            out_specs=pl.BlockSpec((TM, TN), lambda i, j: (i, j)),
        ),
        compiler_params=compiler_params,
        cost_estimate=cost,
    )(x2, wT, bias1)

    # Strip class padding and restore (B, S, C).
    return out[:, :C].reshape(B, S, C)


if __name__ == "__main__":
    key = jax.random.PRNGKey(0)
    kx, kw, kb, kx2, kw2, kx3, kw3 = jax.random.split(key, 7)

    # Config 1: regression head (num_classes=1), tiny graphs, f32.
    B, S, H, C = 2, 9, 32, 1
    x = jax.random.normal(kx, (B, S, H), jnp.float32)
    w = jax.random.normal(kw, (C, H), jnp.float32) / jnp.sqrt(H)
    # torch initializes lm_output_learned_bias to zeros; use non-zero to
    # actually exercise the bias-add path.
    b = jax.random.normal(kb, (1,), jnp.float32)
    out = jax.block_until_ready(graphormer_decoder_head(x, w, b))
    ref = x @ w.T + b[0]
    assert out.shape == (B, S, C), out.shape
    assert jnp.allclose(out, ref, atol=1e-5, rtol=1e-5), \
        float(jnp.max(jnp.abs(out - ref)))

    # Config 2: classification head; exercises multi-step row grid with a
    # partial (masked) trailing row block and class-lane padding (C=10 -> 128).
    B2, S2, H2, C2 = 4, 70, 128, 10
    x_b = jax.random.normal(kx2, (B2, S2, H2), jnp.float32)
    w_b = jax.random.normal(kw2, (C2, H2), jnp.float32) / jnp.sqrt(H2)
    out_b = jax.block_until_ready(graphormer_decoder_head(x_b, w_b, b))
    ref_b = x_b @ w_b.T + b[0]
    assert out_b.shape == (B2, S2, C2), out_b.shape
    assert jnp.allclose(out_b, ref_b, atol=1e-4, rtol=1e-4), \
        float(jnp.max(jnp.abs(out_b - ref_b)))

    # Config 3: bf16 activations stay bf16 end-to-end (f32 accumulation).
    B3, S3, H3, C3 = 2, 17, 64, 3
    x_c = jax.random.normal(kx3, (B3, S3, H3), jnp.float32)
    w_c = jax.random.normal(kw3, (C3, H3), jnp.float32) / jnp.sqrt(H3)
    out_c = jax.block_until_ready(
        graphormer_decoder_head(x_c.astype(jnp.bfloat16), w_c, b))
    ref_c = x_c @ w_c.T + b[0]
    assert out_c.shape == (B3, S3, C3), out_c.shape
    assert out_c.dtype == jnp.bfloat16, out_c.dtype
    assert jnp.allclose(out_c.astype(jnp.float32), ref_c, atol=5e-2, rtol=5e-2), \
        float(jnp.max(jnp.abs(out_c.astype(jnp.float32) - ref_c)))

    print("KERNEL_OK")
</pallas_src>

<mosaic_0001>
module attributes {stable_mosaic.version = 11 : i64} {
  func.func @_decoder_head_kernel(%arg0: i32, %arg1: i32, %arg2: memref<16x32xf32, #tpu.memory_space<vmem>>, %arg3: memref<32x128xf32, #tpu.memory_space<vmem>>, %arg4: memref<1xf32, #tpu.memory_space<smem>>, %arg5: memref<16x128xf32, #tpu.memory_space<vmem>>) attributes {dimension_semantics = [#tpu.dimension_semantics<parallel>, #tpu.dimension_semantics<parallel>], iteration_bounds = array<i64: 2, 1>, scalar_prefetch = 0 : i64, scratch_operands = 0 : i64, tpu.core_type = #tpu.core_type<tc>, window_params = [{transform_indices = @transform_0, window_bounds = array<i64: 16, 32>}, {transform_indices = @transform_1, window_bounds = array<i64: 32, 128>}, {transform_indices = @transform_2, window_bounds = array<i64: 1>}, {transform_indices = @transform_3, window_bounds = array<i64: 16, 128>}]} {
    %c0 = arith.constant 0 : index
    %c0_0 = arith.constant 0 : index
    %0 = vector.load %arg2[%c0, %c0_0] : memref<16x32xf32, #tpu.memory_space<vmem>>, vector<16x32xf32>
    %c0_1 = arith.constant 0 : index
    %c0_2 = arith.constant 0 : index
    %1 = vector.load %arg3[%c0_1, %c0_2] : memref<32x128xf32, #tpu.memory_space<vmem>>, vector<32x128xf32>
    %cst = arith.constant dense<0.000000e+00> : vector<16x128xf32>
    %2 = tpu.matmul %0, %1, %cst {dimension_numbers = #tpu.dot_dimension_numbers<[1], [0], [0], [1], [0, 0, 1, 1], [], []>} : vector<16x32xf32>, vector<32x128xf32>, vector<16x128xf32> -> vector<16x128xf32>
    %c0_3 = arith.constant 0 : index
    %3 = memref.load %arg4[%c0_3] : memref<1xf32, #tpu.memory_space<smem>>
    %4 = vector.broadcast %3 : f32 to vector<16x128xf32>
    %5 = arith.addf %2, %4 : vector<16x128xf32>
    %c0_4 = arith.constant 0 : index
    %c0_5 = arith.constant 0 : index
    %6 = vector.load %arg5[%c0_4, %c0_5] : memref<16x128xf32, #tpu.memory_space<vmem>>, vector<16x128xf32>
    tpu.vector_store %arg5[%c0_4, %c0_5], %5 {strides = array<i32>} : memref<16x128xf32, #tpu.memory_space<vmem>>, vector<16x128xf32>,
    return
  }
  func.func @transform_0(%arg0: i32, %arg1: i32) -> (i32, i32) {
    %c0_i32 = arith.constant 0 : i32
    %c0_i32_0 = arith.constant 0 : i32
    return %arg0, %c0_i32 : i32, i32
  }
  func.func @transform_1(%arg0: i32, %arg1: i32) -> (i32, i32) {
    %c0_i32 = arith.constant 0 : i32
    %c0_i32_0 = arith.constant 0 : i32
    return %c0_i32, %arg1 : i32, i32
  }
  func.func @transform_2(%arg0: i32, %arg1: i32) -> i32 {
    %c0_i32 = arith.constant 0 : i32
    %c0_i32_0 = arith.constant 0 : i32
    return %c0_i32 : i32
  }
  func.func @transform_3(%arg0: i32, %arg1: i32) -> (i32, i32) {
    %c0_i32 = arith.constant 0 : i32
    return %arg0, %arg1 : i32, i32
  }
}

</mosaic_0001>

<bundles_post_ra>
// kernel: tpu_custom_call.1
= control target key start
LH: loop header
LB: loop body
LE: loop exit
PB: predicated region body
PF: predicated region fallthrough
CT: control target
= control target key end

     0   :  { %s921_s0 = inlined_call_operand.hbm [shape: f32[18,32], index: 0, kind: input, shape index: {}]   ;;  %s922_s1 = inlined_call_operand.hbm [shape: f32[32,128], index: 1, kind: input, shape index: {}]   ;;  %s923_s2 = inlined_call_operand.<no memory space> [shape: f32[1], index: 2, kind: input, shape index: {}]   ;;  %s924_s3 = inlined_call_operand.hbm [shape: f32[18,128], index: 3, kind: output, shape index: {}]  }
   0x1   :  { %8 = sst [smem:[#allocation2]] %s923_s2 }
   0x2   :  { %9 = vsyncpa [#allocation4], 0 }
   0x3   :  { %11 = vsyncpa [#allocation4 + $0x1], 0 }
   0x4   :  { %12 = vsyncpa [#allocation7], 0 }
   0x5   :  { %13 = vsyncpa [#allocation5], 0 }
   0x6   :  { %15 = vsyncpa [#allocation5 + $0x1], 0  ;;  %s711_s14 = smov 0   ;;  %s713_s15 = smov 0  }
   0x7   :  { %s715_s16 = smov 0   ;;  %s717_s17 = smov 0  }
   0x8   :  { %s719_s18 = smov 0   ;;  %s721_s19 = smov 0  }
   0x9 LB: > { %s406_s2 = sadd.s32 4294967295, %s677_s19   ;;  %s407_s20 = sadd.s32 4294967294, %s677_s19   ;;  %s677_s19 = sphi %s721_s19, %s21_s19   ;;  %s673_s18 = sphi %s719_s18, %s939_s18   ;;  %s669_s17 = sphi %s717_s17, %s938_s17   ;;  %s665_s16 = sphi %s715_s16, %s937_s16   ;;  %s661_s15 = sphi %s713_s15, %s936_s15   ;;  %s657_s14 = sphi %s711_s14, %s935_s14  }
   0xa   : > { %s33_s21 = sadd.s32 1, %s673_s18  ;;  %s40_s22 = sadd.s32 1, %s665_s16 }
   0xb   : > { %p35_p0 = scmp.ge.s32.totalorder %s33_s21, 2  ;;  %p47_p1 = scmp.ne.s32.totalorder %s665_s16, %s661_s15 }
   0xc   : > { %p48_p2 = scmp.eq.s32.totalorder %s677_s19, 0  ;;  %p53_p3 = scmp.ne.s32.totalorder %s661_s15, %s657_s14 }
   0xd   : > { %s941_s21 = smov (%p35_p0, %s33_s21), 0  ;;  %p756_p5 = scmp.eq.s32.totalorder %s406_s2, 0 }
   0xe   : > { %p752_p4 = por %p48_p2, %p47_p1  ;;  %s37_s25 = ssub.s32 %s673_s18, %s941_s21 }
   0xf   : > { %p126_p6 = scmp.eq.s32.totalorder %s406_s2, 1  ;;  %p38_p7 = scmp.eq.s32.totalorder %s37_s25, 0 }
  0x10   : > { %p764_p8 = por %p756_p5, %p53_p3  ;;  %p132_p10 = scmp.eq.s32.totalorder %s407_s20, 1 }
  0x11   : > { %p768_p9 = por %p126_p6, %p47_p1  ;;  %p408_p12 = scmp.ge.s32.totalorder %s677_s19, 1 }
  0x12   : > { %s773_s28 = scalar_select %p38_p7, %s665_s16, %s40_s22  }
  0x13   : > { %p775_p11 = por %p132_p10, %p53_p3  ;;  %p139_p13 = scmp.lt.s32.totalorder %s677_s19, 3 }
  0x14   : > { %s152_s5 = sshll.u32 %s922_s1, 4  ;;  %s679_s7 = smov [#allocation6]   ;;  %s153_s5 = int_to_ptr.hbm [resolvable:$true] %s152_s5 }
  0x15   : > { %p784_p0 = pnand %p408_p12, %p139_p13  ;;  %s154_s8 = sshll.u32 %s679_s7, 4  ;;  %s155_s8 = int_to_ptr.vmem [resolvable:$true] %s154_s8 }
  0x16   : > { %s680_s9 = smov 128   ;;  %s681_s10 = smov 8  }
  0x17   : > { %p445_p1 = pneg %p784_p0  ;;  %p925_p3 = scmp.ge.s32.totalorder %s677_s19, 2 }
  0x19   : > { %p446_p2 = pnand %p445_p1, %p756_p5  ;;  %167 = sbr.rel (%p925_p3) target bundleno = 66 (0x42), region = 24 }
  0x1b   : > { %448 = dma.hbm_to_vmem [thread:$0]  (!%p446_p2), %s153_s5, 512, %s155_s8, [#allocation7], %s680_s9, %s680_s9, %s681_s10  }
  0x1e   : > { %170 = sbr.rel (!%p752_p4) target bundleno = 66 (0x42), region = 28  ;;  %s171_s11 = sand.u32 (%p752_p4), 1, %s665_s16  }
  0x1f   : > { %s412_s12 = sshll.u32 (%p752_p4), %s673_s18, 1  ;;  %s411_s13 = sshll.u32 (%p752_p4), %s171_s11, 4 }
  0x20   : > { %s177_s2 = ssub.s32 (%p752_p4), 3, %s412_s12  ;;  %s802_s30 = scalar_lea.sflag (%p752_p4), [#allocation4], %s171_s11 }
  0x21   : > { %p178_p6 = scmp.lt.s32.totalorder (%p752_p4), %s177_s2, 2  ;;  %s175_s4 = scalar_lea.vmem (%p752_p4), [#allocation3], %s411_s13 }
  0x23   : > { %s943_s2 = smov (!%p178_p6, %s177_s2), 2 }
  0x24   : > { %s413_s20 = sshll.u32 %s943_s2, 3 }
  0x25   : > { %s181_s22 = ssub.s32 16, %s413_s20 }
  0x26   : > { %s182_s25 = sshll.u32 %s181_s22, 4 }
  0x27   : > { %183 = vsyncadd %s802_s30, %s182_s25  ;;  %p805_p4 = scmp.ne.s32.totalorder %s413_s20, 0  ;;  %s433_s5 = sshll.u32 %s673_s18, 4 }
  0x28   : > { %s186_s9 = scalar_lea.hbm %s921_s0, %s433_s5  ;;  %s813_s10 = sshll.u32 %s175_s4, 4  ;;  %s191_s10 = int_to_ptr.vmem [resolvable:$true] %s813_s10 }
  0x29   : > { %s188_s11 = sshll.u32 %s186_s9, 4  ;;  %s417_s12 = sshll.u32 %s943_s2, 7  ;;  %s816_s11 = int_to_ptr.hbm [resolvable:$true] %s188_s11 }
  0x2a   : > { %s541_s13 = sshra.s32 %s816_s11, 4  ;;  %s543_s20 = sshrl.u32 %s417_s12, 4  ;;  %s542_s13 = int_to_ptr.hbm [resolvable:$true] %s541_s13 }
  0x2b   : > { %s548_s22 = scalar_lea.hbm %s542_s13, %s543_s20  ;;  %s552_s4 = scalar_lea.hbm %s921_s0, 24 }
  0x2c   : > { %p549_p7 = scmp.ne.s32.totalorder %s542_s13, %s548_s22  ;;  %p554_p13 = scmp.lt.s32.totalorder %s552_s4, %s548_s22 }
  0x2e   : > { %p550_p10 = pnand %p549_p7, %p805_p4 }
  0x30   : > { %p551_p12 = pneg %p550_p10 }
  0x32   : > { %p556_p1 = pnand %p554_p13, %p551_p12 }
  0x34   : > { %559 = shalt.err (!%p556_p1)
}
  0x35   : > { %s560_s7 = sshra.s32 %s191_s10, 4  ;;  %s682_s9 = smov [#allocation3]   ;;  %s561_s7 = int_to_ptr.vmem [resolvable:$true] %s560_s7 }
  0x36   : > { %s567_s8 = scalar_lea.vmem %s561_s7, %s543_s20  ;;  %s571_s13 = scalar_lea.vmem %s682_s9, 32 }
  0x37   : > { %p568_p2 = scmp.ne.s32.totalorder %s561_s7, %s567_s8  ;;  %p573_p7 = scmp.lt.s32.totalorder %s571_s13, %s567_s8 }
  0x39   : > { %p569_p6 = pnand %p568_p2, %p805_p4 }
  0x3b   : > { %p570_p3 = pneg %p569_p6 }
  0x3d   : > { %p575_p10 = pnand %p573_p7, %p570_p3 }
  0x3f   : > { %578 = shalt.err (!%p575_p10)
}
  0x40   : > { %s683_s25 = smov 128   ;;  %s684_s22 = smov 8  }
  0x41   : > { %196 = dma.hbm_to_vmem [thread:$0]  (%p805_p4), %s816_s11, %s417_s12, %s191_s10, %s802_s30, %s683_s25, %s683_s25, %s684_s22  }
  0x42 PF: > { %202 = sbr.rel (%p784_p0) target bundleno = 243 (0xf3), region = 32  ;;  %s842_s20 = sand.u32 (!%p784_p0), 1, %s661_s15  }
  0x43   : > { %s419_s5 = sshll.u32 (!%p784_p0), %s842_s20, 4  ;;  %s205_s4 = scalar_lea.sflag (!%p784_p0), [#allocation4], %s842_s20 }
  0x44   : > { %s208_s7 = scalar_lea.vmem (!%p784_p0), [#allocation3], %s419_s5 }
  0x47   : > { %644 = dma.done.wait (%p764_p8), %s205_s4, 256  }
  0x48   : > { %646 = vsyncadd (%p764_p8), %s205_s4, 4294967040 }
  0x49   : > { %648 = dma.done.wait (%p756_p5), [#allocation7], 512  }
  0x4a   : > { %650 = vsyncadd (%p756_p5), [#allocation7], 4294966784  ;;  %v252_v0 = vld [vmem:[#allocation6 + $0x18] sm:$0xff]  ;;  %v251_v1 = vld [vmem:[#allocation6 + $0x10] sm:$0xff]  ;;  %vm255_vm0 = vcmask 261120   ;;  %s253_s24 = sld [smem:[#allocation2]] }
  0x4b   : > { %274 = vmatpush.msra.mxu0 %v252_v0  ;;  %435 = vmatpush.msra.mxu1 %v252_v0  ;;  %v250_v2 = vld [vmem:[#allocation6 + $0x8] sm:$0xff]  ;;  %v249_v3 = vld [vmem:[#allocation6] sm:$0xff]  ;;  %s236_s26 = scalar_lea.vmem [#allocation8], %s419_s5  ;;  %s288_s6 = scalar_lea.sflag [#allocation5], %s842_s20 }
  0x4c   : > { %v247_v4 = vld [vmem:[%s208_s7] sm:$0xff]  ;;  %v248_v5 = vld [vmem:[%s208_s7 + $0x8] sm:$0xff]  ;;  %s425_s2 = sshll.u32 (%p768_p9), %s669_s17, 1 }
  0x4d   : > { %275 = vmatpush.msra.mxu0 %v251_v1  ;;  %436 = vmatpush.msra.mxu1 %v251_v1  ;;  %s296_s30 = ssub.s32 (%p768_p9), 3, %s425_s2 }
  0x4e   : > { %p297_p5 = scmp.lt.s32.totalorder (%p768_p9), %s296_s30, 2 }
  0x4f   : > { %276 = vmatpush.msra.mxu0 %v250_v2  ;;  %437 = vmatpush.msra.mxu1 %v250_v2 }
  0x50   : > { %v254_v6 = vstv %s253_s24 }
  0x51   : > { %277 = vmatpush.msra.mxu0 %v249_v3  ;;  %438 = vmatpush.msra.mxu1 %v249_v3 }
  0x52   : > { %422 = vmatmul.msk.f32.vlgmr.msra.gmra.mxu0 %vm255_vm0, %v247_v4  ;;  %423 = vmatmul.msk.f32.vlgmr.msra.gmra.mxu1 %vm255_vm0, %v248_v5 }
  0xcf   : > { %v279_v7 = vpop.f32.mrf.mxu0  ;;  %v282_v8 = vpop.f32.mrf.mxu1  ;;  %294 = sbr.rel (!%p768_p9) target bundleno = 243 (0xf3), region = 44 }
  0xd0   : > { %v280_v9 = vadd.f32 %v279_v7, %v254_v6  ;;  %v283_v10 = vadd.f32 %v282_v8, %v254_v6 }
  0xd2   : > { %285 = vst [vmem:[%s236_s26] sm:$0xff] %v280_v9 }
  0xd3   : > { %286 = vst [vmem:[%s236_s26 + $0x8] sm:$0xff] %v283_v10 }
  0xd4   : > { %s945_s30 = smov (!%p297_p5, %s296_s30), 2 }
  0xd5   : > { %s426_s23 = sshll.u32 %s945_s30, 3 }
  0xd6   : > { %s300_s10 = ssub.s32 16, %s426_s23 }
  0xd7   : > { %s301_s11 = sshll.u32 %s300_s10, 4 }
  0xd8   : > { %302 = vsyncadd %s288_s6, %s301_s11  ;;  %p863_p8 = scmp.ne.s32.totalorder %s426_s23, 0  ;;  %s434_s27 = sshll.u32 %s669_s17, 4 }
  0xd9   : > { %s306_s13 = scalar_lea.hbm %s924_s3, %s434_s27  ;;  %s308_s25 = sshll.u32 %s236_s26, 4  ;;  %s871_s25 = int_to_ptr.vmem [resolvable:$true] %s308_s25 }
  0xda   : > { %s310_s22 = sshll.u32 %s306_s13, 4  ;;  %s430_s5 = sshll.u32 %s945_s30, 7  ;;  %s873_s22 = int_to_ptr.hbm [resolvable:$true] %s310_s22 }
  0xdb   : > { %s580_s4 = sshra.s32 %s871_s25, 4  ;;  %s582_s7 = sshrl.u32 %s430_s5, 4  ;;  %s581_s4 = int_to_ptr.vmem [resolvable:$true] %s580_s4 }
  0xdc   : > { %s587_s24 = scalar_lea.vmem %s581_s4, %s582_s7  ;;  %s685_s17 = smov [#allocation8]  }
  0xdd   : > { %p588_p9 = scmp.ne.s32.totalorder %s581_s4, %s587_s24  ;;  %s591_s2 = scalar_lea.vmem %s685_s17, 32 }
  0xde   : > { %p593_p4 = scmp.lt.s32.totalorder %s591_s2, %s587_s24 }
  0xdf   : > { %p589_p0 = pnand %p588_p9, %p863_p8 }
  0xe1   : > { %p590_p3 = pneg %p589_p0 }
  0xe3   : > { %p595_p12 = pnand %p593_p4, %p590_p3 }
  0xe5   : > { %598 = shalt.err (!%p595_p12)
}
  0xe6   : > { %s599_s26 = sshra.s32 %s873_s22, 4  ;;  %s610_s27 = scalar_lea.hbm %s924_s3, 24  ;;  %s600_s26 = int_to_ptr.hbm [resolvable:$true] %s599_s26 }
  0xe7   : > { %s606_s23 = scalar_lea.hbm %s600_s26, %s582_s7  ;;  %p611_p6 = scmp.lt.s32.totalorder %s600_s26, %s924_s3 }
  0xe8   : > { %p607_p13 = scmp.ne.s32.totalorder %s600_s26, %s606_s23  ;;  %p612_p7 = scmp.lt.s32.totalorder %s610_s27, %s606_s23 }
  0xea   : > { %p608_p1 = pnand %p607_p13, %p863_p8  ;;  %p613_p10 = por %p612_p7, %p611_p6 }
  0xec   : > { %p609_p2 = pneg %p608_p1 }
  0xee   : > { %p614_p5 = pnand %p613_p10, %p609_p2 }
  0xf0   : > { %617 = shalt.err (!%p614_p5)
}
  0xf1   : > { %s686_s13 = smov 128   ;;  %s687_s4 = smov 8  }
  0xf2   : > { %316 = dma.vmem_to_hbm [thread:$0]  (%p863_p8), %s871_s25, %s430_s5, %s873_s22, %s288_s6, %s686_s13, %s686_s13, %s687_s4  }
  0xf3 PF: > { %s325_s7 = sand.u32 1, %s657_s14   ;;  %p934_p9 = scmp.ge.s32.totalorder %s677_s19, 2 }
  0xf4   : > { %s326_s24 = scalar_lea.sflag [#allocation5], %s325_s7 }
  0xf5   : > { %p450_p0 = pnand %p934_p9, %p775_p11 }
  0xf7   : > { %p451_p3 = pneg %p450_p0 }
  0xf9   : > { %652 = dma.done.wait (%p451_p3), %s326_s24, 256  }
  0xfa   : > { %654 = vsyncadd (%p451_p3), %s326_s24, 4294967040  ;;  %s21_s19 = sadd.s32 1, %s677_s19   ;;  %s935_s14 = smov %s661_s15 }
  0xfb   : > { %p18_p4 = scmp.ge.s32.totalorder %s21_s19, 4   ;;  %s936_s15 = smov %s665_s16 }
  0xfc   : > { %s937_s16 = smov %s773_s28  ;;  %s938_s17 = smov %s673_s18 }
  0xfd   : > { %s939_s18 = smov %s941_s21  ;;  %20 = sbr.rel (!%p18_p4) target bundleno = 9 (0x9), region = 82 }
 0x102   :  { %332 = vsyncpa [#allocation4], 1 }
 0x103   :  { %334 = vsyncpa [#allocation4 + $0x1], 1 }
 0x104   :  { %335 = vsyncpa [#allocation7], 1 }
 0x105   :  { %336 = vsyncpa [#allocation5], 1 }
 0x106   :  { %338 = vsyncpa [#allocation5 + $0x1], 1 }

</bundles_post_ra>
